<compile_context>
chip_gen: v7x
topology: tpu7x:2x2x1
jax: 0.10.0
libtpu: 0.0.40
codegen_flags: <defaults>
</compile_context>

<pallas_src>
import math
import functools

import jax
import jax.numpy as jnp
from jax.experimental import pallas as pl
from jax.experimental.pallas import tpu as pltpu


def _downsample_block_kernel(x_ref, w1_ref, b1_ref, w2_ref, b2_ref, o_ref,
                             y1pad_ref, *, Ho, Wo, Cin, Cmid, K, compute_dtype):
    """Fused [conv3x3 s2 + ReLU] -> [conv3x3 s1 + ReLU] for one batch block.

    x_ref:     (NB, Hh, 2, Wq, 2*Cin)  padded input, stride-2 phases folded
               (H-phase -> its own leading axis, W-phase -> lane axis)
    w1_ref:    (9, Cin, Cmid)   per-tap conv1 weights
    b1_ref:    (1, Cmid)
    w2_ref:    (9, Cmid, Cmid)  per-tap conv2 weights
    b2_ref:    (1, Cmid)
    o_ref:     (NB, Ho, Wo, Cmid)
    y1pad_ref: (NB, Ho+2, Wo+2, Cmid)  VMEM scratch for the intermediate
               activation with a 1-pixel zero halo.
    """
    NB = o_ref.shape[0]
    M = NB * Ho * Wo
    f32 = jnp.float32

    b1 = b1_ref[...].astype(f32)          # (1, Cmid)
    b2 = b2_ref[...].astype(f32)          # (1, Cmid)

    # ---------------- conv1: 3x3, stride 2, pad 1 (+ ReLU) ----------------
    # x_pad[b, 2i+kh, 2j+kw, c] == x_ref[b, i+kh//2, kh%2, j+kw//2, (kw%2)*Cin+c]
    acc1 = jnp.zeros((M, Cmid), f32)
    for kh in range(K):
        ah, ph = kh // 2, kh % 2
        for kw in range(K):
            aw, pw = kw // 2, kw % 2
            patch = x_ref[:, ah:ah + Ho, ph:ph + 1, aw:aw + Wo,
                          pw * Cin:(pw + 1) * Cin]          # (NB,Ho,1,Wo,Cin)
            patch = patch.reshape(M, Cin).astype(compute_dtype)
            w_tap = w1_ref[kh * K + kw].astype(compute_dtype)   # (Cin, Cmid)
            acc1 = acc1 + jnp.dot(patch, w_tap,
                                  preferred_element_type=f32)
    y1 = jnp.maximum(acc1 + b1, 0.0)                         # (M, Cmid) f32

    # Stash the intermediate (with a zero halo) in VMEM for conv2.
    y1pad_ref[...] = jnp.zeros(y1pad_ref.shape, y1pad_ref.dtype)
    y1pad_ref[:, 1:1 + Ho, 1:1 + Wo, :] = y1.reshape(NB, Ho, Wo, Cmid)

    # ---------------- conv2: 3x3, stride 1, pad 1 (+ ReLU) ----------------
    acc2 = jnp.zeros((M, Cmid), f32)
    for kh in range(K):
        for kw in range(K):
            patch = y1pad_ref[:, kh:kh + Ho, kw:kw + Wo, :]  # (NB,Ho,Wo,Cmid)
            patch = patch.reshape(M, Cmid).astype(compute_dtype)
            w_tap = w2_ref[kh * K + kw].astype(compute_dtype)   # (Cmid, Cmid)
            acc2 = acc2 + jnp.dot(patch, w_tap,
                                  preferred_element_type=f32)
    out = jnp.maximum(acc2 + b2, 0.0)                        # (M, Cmid) f32

    # Single full-tile store of the whole block's output.
    o_ref[...] = out.reshape(NB, Ho, Wo, Cmid).astype(o_ref.dtype)


def _downsample_forward(x_nchw, params, *, compute_dtype=jnp.float32):
    """Forward pass of DownsampleBlock (convNum=2, normLayer=None).

    x_nchw: (B, Cin, H, W) float32. Returns (B, Cout, Ho, Wo).
    params: [(w1 HWIO (3,3,Cin,Cout), b1 (Cout,)), (w2 HWIO (3,3,Cout,Cout), b2)]
    """
    (w1, b1), (w2, b2) = params
    B, Cin, H, W = x_nchw.shape
    K = 3
    Cmid = w1.shape[-1]
    pad = 1
    stride = 2
    Ho = (H + 2 * pad - K) // stride + 1
    Wo = (W + 2 * pad - K) // stride + 1

    # NCHW -> NHWC, pad spatially by 1 (extra bottom/right zero so padded dims
    # are even), then FREE row-major reshapes to fold the stride-2 phases:
    #   (B, Hp, Wp, Cin) -> (B, Hp/2, 2, Wp/2, 2*Cin)
    Hp = H + 2 * pad
    Wp = W + 2 * pad
    Hp_e = Hp + (Hp % 2)
    Wp_e = Wp + (Wp % 2)
    Hh, Wq = Hp_e // 2, Wp_e // 2

    x = jnp.transpose(x_nchw, (0, 2, 3, 1))
    x = jnp.pad(x, ((0, 0),
                    (pad, Hp_e - H - pad),
                    (pad, Wp_e - W - pad),
                    (0, 0)))
    x = x.reshape(B, Hh, 2, Wq, 2 * Cin)

    # Dense per-tap weight slabs + 2-D biases.
    w1_taps = w1.reshape(K * K, Cin, Cmid)
    w2_taps = w2.reshape(K * K, Cmid, Cmid)
    b1_2 = b1.reshape(1, Cmid)
    b2_2 = b2.reshape(1, Cmid)

    # Grid over batch blocks: 2 parallel blocks when possible (v7x: 2 TCs),
    # batch inside a block folded into the matmul M dimension.
    nblk = 2 if (B >= 2 and B % 2 == 0) else 1
    NB = B // nblk

    kernel = functools.partial(_downsample_block_kernel,
                               Ho=Ho, Wo=Wo, Cin=Cin, Cmid=Cmid, K=K,
                               compute_dtype=compute_dtype)

    out_nhwc = pl.pallas_call(
        kernel,
        out_shape=jax.ShapeDtypeStruct((B, Ho, Wo, Cmid), x_nchw.dtype),
        grid=(nblk,),
        in_specs=[
            pl.BlockSpec((NB, Hh, 2, Wq, 2 * Cin),
                         lambda i: (i, 0, 0, 0, 0)),
            pl.BlockSpec((K * K, Cin, Cmid), lambda i: (0, 0, 0)),
            pl.BlockSpec((1, Cmid), lambda i: (0, 0)),
            pl.BlockSpec((K * K, Cmid, Cmid), lambda i: (0, 0, 0)),
            pl.BlockSpec((1, Cmid), lambda i: (0, 0)),
        ],
        out_specs=pl.BlockSpec((NB, Ho, Wo, Cmid), lambda i: (i, 0, 0, 0)),
        scratch_shapes=[pltpu.VMEM((NB, Ho + 2, Wo + 2, Cmid), jnp.float32)],
        compiler_params=pltpu.CompilerParams(
            dimension_semantics=("parallel",)),
    )(x, w1_taps, b1_2, w2_taps, b2_2)

    return jnp.transpose(out_nhwc, (0, 3, 1, 2))  # NHWC -> NCHW


_downsample_forward_jit = jax.jit(_downsample_forward,
                                  static_argnames=("compute_dtype",))


class DownsampleBlockPallas:
    """JAX/Pallas port of DownsampleBlock (convNum=2, normLayer=None)."""

    def __init__(self, inChannels, outChannels, convNum=2, *, key,
                 compute_dtype=jnp.float32):
        # TODO(synk): only convNum=2 / normLayer=None (the module defaults)
        # are implemented by the fused kernel.
        assert convNum == 2, "fused Pallas kernel supports convNum=2 only"
        self.compute_dtype = compute_dtype
        keys = jax.random.split(key, 2 * convNum)
        self.params = []
        cin = inChannels
        for i in range(convNum):
            # PyTorch Conv2d defaults: kaiming_uniform_(a=sqrt(5)) ->
            # weight bound = 1/sqrt(fan_in); bias bound = 1/sqrt(fan_in).
            fan_in = cin * 9
            w_bound = 1.0 / math.sqrt(fan_in)
            b_bound = 1.0 / math.sqrt(fan_in)
            w = jax.random.uniform(keys[2 * i], (3, 3, cin, outChannels),
                                   minval=-w_bound, maxval=w_bound,
                                   dtype=jnp.float32)
            b = jax.random.uniform(keys[2 * i + 1], (outChannels,),
                                   minval=-b_bound, maxval=b_bound,
                                   dtype=jnp.float32)
            self.params.append((w, b))
            cin = outChannels

    def __call__(self, x_nchw):
        return _downsample_forward_jit(x_nchw, self.params,
                                       compute_dtype=self.compute_dtype)


def reference_forward(x_nchw, params):
    """Pure-JAX reference (lax conv) matching the PyTorch semantics."""
    y = x_nchw
    for i, (w, b) in enumerate(params):
        stride = 2 if i == 0 else 1
        y = jax.lax.conv_general_dilated(
            y, w, window_strides=(stride, stride),
            padding=((1, 1), (1, 1)),
            dimension_numbers=("NCHW", "HWIO", "NCHW"))
        y = jnp.maximum(y + b.reshape(1, -1, 1, 1), 0.0)
    return y


if __name__ == "__main__":
    key = jax.random.PRNGKey(0)
    k_x, k_p = jax.random.split(key)

    B, Cin, H, W = 2, 4, 16, 16
    Cout = 8
    x = jax.random.normal(k_x, (B, Cin, H, W), dtype=jnp.float32)

    block = DownsampleBlockPallas(Cin, Cout, convNum=2, key=k_p)

    y = jax.block_until_ready(block(x))
    assert y.shape == (B, Cout, H // 2, W // 2), y.shape

    y_ref = reference_forward(x, block.params)
    max_err = float(jnp.max(jnp.abs(y - y_ref)))
    assert jnp.allclose(y, y_ref, atol=1e-4, rtol=1e-4), max_err

    print("KERNEL_OK")
</pallas_src>

<mosaic_0001>
module attributes {stable_mosaic.version = 11 : i64} {
  func.func @_downsample_block_kernel(%arg0: i32, %arg1: memref<1x9x2x9x8xf32, #tpu.memory_space<vmem>>, %arg2: memref<9x4x8xf32, #tpu.memory_space<vmem>>, %arg3: memref<1x8xf32, #tpu.memory_space<vmem>>, %arg4: memref<9x8x8xf32, #tpu.memory_space<vmem>>, %arg5: memref<1x8xf32, #tpu.memory_space<vmem>>, %arg6: memref<1x8x8x8xf32, #tpu.memory_space<vmem>>, %arg7: memref<1x10x10x8xf32, #tpu.memory_space<vmem>>) attributes {dimension_semantics = [#tpu.dimension_semantics<parallel>], iteration_bounds = array<i64: 2>, scalar_prefetch = 0 : i64, scratch_operands = 1 : i64, tpu.core_type = #tpu.core_type<tc>, window_params = [{transform_indices = @transform_0, window_bounds = array<i64: 1, 9, 2, 9, 8>}, {pipeline_mode = #tpu.pipeline_mode<synchronous>, transform_indices = @transform_1, window_bounds = array<i64: 9, 4, 8>}, {pipeline_mode = #tpu.pipeline_mode<synchronous>, transform_indices = @transform_2, window_bounds = array<i64: 1, 8>}, {pipeline_mode = #tpu.pipeline_mode<synchronous>, transform_indices = @transform_3, window_bounds = array<i64: 9, 8, 8>}, {pipeline_mode = #tpu.pipeline_mode<synchronous>, transform_indices = @transform_4, window_bounds = array<i64: 1, 8>}, {transform_indices = @transform_5, window_bounds = array<i64: 1, 8, 8, 8>}]} {
    %c0 = arith.constant 0 : index
    %c0_0 = arith.constant 0 : index
    %0 = vector.load %arg3[%c0, %c0_0] : memref<1x8xf32, #tpu.memory_space<vmem>>, vector<1x8xf32>
    %c0_1 = arith.constant 0 : index
    %c0_2 = arith.constant 0 : index
    %1 = vector.load %arg5[%c0_1, %c0_2] : memref<1x8xf32, #tpu.memory_space<vmem>>, vector<1x8xf32>
    %cst = arith.constant 0.000000e+00 : f32
    %2 = vector.broadcast %cst : f32 to vector<64x8xf32>
    %c0_3 = arith.constant 0 : index
    %c0_4 = arith.constant 0 : index
    %c0_5 = arith.constant 0 : index
    %c0_6 = arith.constant 0 : index
    %c0_7 = arith.constant 0 : index
    %3 = vector.load %arg1[%c0_3, %c0_4, %c0_5, %c0_6, %c0_7] : memref<1x9x2x9x8xf32, #tpu.memory_space<vmem>>, vector<1x8x1x8x4xf32>
    %4 = vector.shape_cast %3 : vector<1x8x1x8x4xf32> to vector<64x4xf32>
    %c0_8 = arith.constant 0 : index
    %c0_9 = arith.constant 0 : index
    %c0_10 = arith.constant 0 : index
    %5 = vector.load %arg2[%c0_8, %c0_9, %c0_10] : memref<9x4x8xf32, #tpu.memory_space<vmem>>, vector<1x4x8xf32>
    %6 = vector.shape_cast %5 : vector<1x4x8xf32> to vector<4x8xf32>
    %cst_11 = arith.constant dense<0.000000e+00> : vector<64x8xf32>
    %7 = tpu.matmul %4, %6, %cst_11 {dimension_numbers = #tpu.dot_dimension_numbers<[1], [0], [0], [1], [0, 0, 1, 1], [], []>} : vector<64x4xf32>, vector<4x8xf32>, vector<64x8xf32> -> vector<64x8xf32>
    %8 = arith.addf %2, %7 : vector<64x8xf32>
    %c0_12 = arith.constant 0 : index
    %c0_13 = arith.constant 0 : index
    %c0_14 = arith.constant 0 : index
    %c0_15 = arith.constant 0 : index
    %c4 = arith.constant 4 : index
    %9 = vector.load %arg1[%c0_12, %c0_13, %c0_14, %c0_15, %c4] : memref<1x9x2x9x8xf32, #tpu.memory_space<vmem>>, vector<1x8x1x8x4xf32>
    %10 = vector.shape_cast %9 : vector<1x8x1x8x4xf32> to vector<64x4xf32>
    %c1 = arith.constant 1 : index
    %c0_16 = arith.constant 0 : index
    %c0_17 = arith.constant 0 : index
    %11 = vector.load %arg2[%c1, %c0_16, %c0_17] : memref<9x4x8xf32, #tpu.memory_space<vmem>>, vector<1x4x8xf32>
    %12 = vector.shape_cast %11 : vector<1x4x8xf32> to vector<4x8xf32>
    %cst_18 = arith.constant dense<0.000000e+00> : vector<64x8xf32>
    %13 = tpu.matmul %10, %12, %cst_18 {dimension_numbers = #tpu.dot_dimension_numbers<[1], [0], [0], [1], [0, 0, 1, 1], [], []>} : vector<64x4xf32>, vector<4x8xf32>, vector<64x8xf32> -> vector<64x8xf32>
    %14 = arith.addf %8, %13 : vector<64x8xf32>
    %c0_19 = arith.constant 0 : index
    %c0_20 = arith.constant 0 : index
    %c0_21 = arith.constant 0 : index
    %c1_22 = arith.constant 1 : index
    %c0_23 = arith.constant 0 : index
    %15 = vector.load %arg1[%c0_19, %c0_20, %c0_21, %c1_22, %c0_23] : memref<1x9x2x9x8xf32, #tpu.memory_space<vmem>>, vector<1x8x1x8x4xf32>
    %16 = vector.shape_cast %15 : vector<1x8x1x8x4xf32> to vector<64x4xf32>
    %c2 = arith.constant 2 : index
    %c0_24 = arith.constant 0 : index
    %c0_25 = arith.constant 0 : index
    %17 = vector.load %arg2[%c2, %c0_24, %c0_25] : memref<9x4x8xf32, #tpu.memory_space<vmem>>, vector<1x4x8xf32>
    %18 = vector.shape_cast %17 : vector<1x4x8xf32> to vector<4x8xf32>
    %cst_26 = arith.constant dense<0.000000e+00> : vector<64x8xf32>
    %19 = tpu.matmul %16, %18, %cst_26 {dimension_numbers = #tpu.dot_dimension_numbers<[1], [0], [0], [1], [0, 0, 1, 1], [], []>} : vector<64x4xf32>, vector<4x8xf32>, vector<64x8xf32> -> vector<64x8xf32>
    %20 = arith.addf %14, %19 : vector<64x8xf32>
    %c0_27 = arith.constant 0 : index
    %c0_28 = arith.constant 0 : index
    %c1_29 = arith.constant 1 : index
    %c0_30 = arith.constant 0 : index
    %c0_31 = arith.constant 0 : index
    %21 = vector.load %arg1[%c0_27, %c0_28, %c1_29, %c0_30, %c0_31] : memref<1x9x2x9x8xf32, #tpu.memory_space<vmem>>, vector<1x8x1x8x4xf32>
    %22 = vector.shape_cast %21 : vector<1x8x1x8x4xf32> to vector<64x4xf32>
    %c3 = arith.constant 3 : index
    %c0_32 = arith.constant 0 : index
    %c0_33 = arith.constant 0 : index
    %23 = vector.load %arg2[%c3, %c0_32, %c0_33] : memref<9x4x8xf32, #tpu.memory_space<vmem>>, vector<1x4x8xf32>
    %24 = vector.shape_cast %23 : vector<1x4x8xf32> to vector<4x8xf32>
    %cst_34 = arith.constant dense<0.000000e+00> : vector<64x8xf32>
    %25 = tpu.matmul %22, %24, %cst_34 {dimension_numbers = #tpu.dot_dimension_numbers<[1], [0], [0], [1], [0, 0, 1, 1], [], []>} : vector<64x4xf32>, vector<4x8xf32>, vector<64x8xf32> -> vector<64x8xf32>
    %26 = arith.addf %20, %25 : vector<64x8xf32>
    %c0_35 = arith.constant 0 : index
    %c0_36 = arith.constant 0 : index
    %c1_37 = arith.constant 1 : index
    %c0_38 = arith.constant 0 : index
    %c4_39 = arith.constant 4 : index
    %27 = vector.load %arg1[%c0_35, %c0_36, %c1_37, %c0_38, %c4_39] : memref<1x9x2x9x8xf32, #tpu.memory_space<vmem>>, vector<1x8x1x8x4xf32>
    %28 = vector.shape_cast %27 : vector<1x8x1x8x4xf32> to vector<64x4xf32>
    %c4_40 = arith.constant 4 : index
    %c0_41 = arith.constant 0 : index
    %c0_42 = arith.constant 0 : index
    %29 = vector.load %arg2[%c4_40, %c0_41, %c0_42] : memref<9x4x8xf32, #tpu.memory_space<vmem>>, vector<1x4x8xf32>
    %30 = vector.shape_cast %29 : vector<1x4x8xf32> to vector<4x8xf32>
    %cst_43 = arith.constant dense<0.000000e+00> : vector<64x8xf32>
    %31 = tpu.matmul %28, %30, %cst_43 {dimension_numbers = #tpu.dot_dimension_numbers<[1], [0], [0], [1], [0, 0, 1, 1], [], []>} : vector<64x4xf32>, vector<4x8xf32>, vector<64x8xf32> -> vector<64x8xf32>
    %32 = arith.addf %26, %31 : vector<64x8xf32>
    %c0_44 = arith.constant 0 : index
    %c0_45 = arith.constant 0 : index
    %c1_46 = arith.constant 1 : index
    %c1_47 = arith.constant 1 : index
    %c0_48 = arith.constant 0 : index
    %33 = vector.load %arg1[%c0_44, %c0_45, %c1_46, %c1_47, %c0_48] : memref<1x9x2x9x8xf32, #tpu.memory_space<vmem>>, vector<1x8x1x8x4xf32>
    %34 = vector.shape_cast %33 : vector<1x8x1x8x4xf32> to vector<64x4xf32>
    %c5 = arith.constant 5 : index
    %c0_49 = arith.constant 0 : index
    %c0_50 = arith.constant 0 : index
    %35 = vector.load %arg2[%c5, %c0_49, %c0_50] : memref<9x4x8xf32, #tpu.memory_space<vmem>>, vector<1x4x8xf32>
    %36 = vector.shape_cast %35 : vector<1x4x8xf32> to vector<4x8xf32>
    %cst_51 = arith.constant dense<0.000000e+00> : vector<64x8xf32>
    %37 = tpu.matmul %34, %36, %cst_51 {dimension_numbers = #tpu.dot_dimension_numbers<[1], [0], [0], [1], [0, 0, 1, 1], [], []>} : vector<64x4xf32>, vector<4x8xf32>, vector<64x8xf32> -> vector<64x8xf32>
    %38 = arith.addf %32, %37 : vector<64x8xf32>
    %c0_52 = arith.constant 0 : index
    %c1_53 = arith.constant 1 : index
    %c0_54 = arith.constant 0 : index
    %c0_55 = arith.constant 0 : index
    %c0_56 = arith.constant 0 : index
    %39 = vector.load %arg1[%c0_52, %c1_53, %c0_54, %c0_55, %c0_56] : memref<1x9x2x9x8xf32, #tpu.memory_space<vmem>>, vector<1x8x1x8x4xf32>
    %40 = vector.shape_cast %39 : vector<1x8x1x8x4xf32> to vector<64x4xf32>
    %c6 = arith.constant 6 : index
    %c0_57 = arith.constant 0 : index
    %c0_58 = arith.constant 0 : index
    %41 = vector.load %arg2[%c6, %c0_57, %c0_58] : memref<9x4x8xf32, #tpu.memory_space<vmem>>, vector<1x4x8xf32>
    %42 = vector.shape_cast %41 : vector<1x4x8xf32> to vector<4x8xf32>
    %cst_59 = arith.constant dense<0.000000e+00> : vector<64x8xf32>
    %43 = tpu.matmul %40, %42, %cst_59 {dimension_numbers = #tpu.dot_dimension_numbers<[1], [0], [0], [1], [0, 0, 1, 1], [], []>} : vector<64x4xf32>, vector<4x8xf32>, vector<64x8xf32> -> vector<64x8xf32>
    %44 = arith.addf %38, %43 : vector<64x8xf32>
    %c0_60 = arith.constant 0 : index
    %c1_61 = arith.constant 1 : index
    %c0_62 = arith.constant 0 : index
    %c0_63 = arith.constant 0 : index
    %c4_64 = arith.constant 4 : index
    %45 = vector.load %arg1[%c0_60, %c1_61, %c0_62, %c0_63, %c4_64] : memref<1x9x2x9x8xf32, #tpu.memory_space<vmem>>, vector<1x8x1x8x4xf32>
    %46 = vector.shape_cast %45 : vector<1x8x1x8x4xf32> to vector<64x4xf32>
    %c7 = arith.constant 7 : index
    %c0_65 = arith.constant 0 : index
    %c0_66 = arith.constant 0 : index
    %47 = vector.load %arg2[%c7, %c0_65, %c0_66] : memref<9x4x8xf32, #tpu.memory_space<vmem>>, vector<1x4x8xf32>
    %48 = vector.shape_cast %47 : vector<1x4x8xf32> to vector<4x8xf32>
    %cst_67 = arith.constant dense<0.000000e+00> : vector<64x8xf32>
    %49 = tpu.matmul %46, %48, %cst_67 {dimension_numbers = #tpu.dot_dimension_numbers<[1], [0], [0], [1], [0, 0, 1, 1], [], []>} : vector<64x4xf32>, vector<4x8xf32>, vector<64x8xf32> -> vector<64x8xf32>
    %50 = arith.addf %44, %49 : vector<64x8xf32>
    %c0_68 = arith.constant 0 : index
    %c1_69 = arith.constant 1 : index
    %c0_70 = arith.constant 0 : index
    %c1_71 = arith.constant 1 : index
    %c0_72 = arith.constant 0 : index
    %51 = vector.load %arg1[%c0_68, %c1_69, %c0_70, %c1_71, %c0_72] : memref<1x9x2x9x8xf32, #tpu.memory_space<vmem>>, vector<1x8x1x8x4xf32>
    %52 = vector.shape_cast %51 : vector<1x8x1x8x4xf32> to vector<64x4xf32>
    %c8 = arith.constant 8 : index
    %c0_73 = arith.constant 0 : index
    %c0_74 = arith.constant 0 : index
    %53 = vector.load %arg2[%c8, %c0_73, %c0_74] : memref<9x4x8xf32, #tpu.memory_space<vmem>>, vector<1x4x8xf32>
    %54 = vector.shape_cast %53 : vector<1x4x8xf32> to vector<4x8xf32>
    %cst_75 = arith.constant dense<0.000000e+00> : vector<64x8xf32>
    %55 = tpu.matmul %52, %54, %cst_75 {dimension_numbers = #tpu.dot_dimension_numbers<[1], [0], [0], [1], [0, 0, 1, 1], [], []>} : vector<64x4xf32>, vector<4x8xf32>, vector<64x8xf32> -> vector<64x8xf32>
    %56 = arith.addf %50, %55 : vector<64x8xf32>
    %57 = vector.broadcast %0 : vector<1x8xf32> to vector<64x8xf32>
    %58 = arith.addf %56, %57 : vector<64x8xf32>
    %cst_76 = arith.constant 0.000000e+00 : f32
    %59 = vector.broadcast %cst_76 : f32 to vector<64x8xf32>
    %60 = arith.maximumf %58, %59 : vector<64x8xf32>
    %cst_77 = arith.constant 0.000000e+00 : f32
    %61 = vector.broadcast %cst_77 : f32 to vector<1x10x10x8xf32>
    %c0_78 = arith.constant 0 : index
    %c0_79 = arith.constant 0 : index
    %c0_80 = arith.constant 0 : index
    %c0_81 = arith.constant 0 : index
    %62 = vector.load %arg7[%c0_78, %c0_79, %c0_80, %c0_81] : memref<1x10x10x8xf32, #tpu.memory_space<vmem>>, vector<1x10x10x8xf32>
    tpu.vector_store %arg7[%c0_78, %c0_79, %c0_80, %c0_81], %61 {strides = array<i32>} : memref<1x10x10x8xf32, #tpu.memory_space<vmem>>, vector<1x10x10x8xf32>,
    %63 = vector.shape_cast %60 : vector<64x8xf32> to vector<1x8x8x8xf32>
    %c0_82 = arith.constant 0 : index
    %c1_83 = arith.constant 1 : index
    %c1_84 = arith.constant 1 : index
    %c0_85 = arith.constant 0 : index
    %64 = vector.load %arg7[%c0_82, %c1_83, %c1_84, %c0_85] : memref<1x10x10x8xf32, #tpu.memory_space<vmem>>, vector<1x8x8x8xf32>
    tpu.vector_store %arg7[%c0_82, %c1_83, %c1_84, %c0_85], %63 {strides = array<i32>} : memref<1x10x10x8xf32, #tpu.memory_space<vmem>>, vector<1x8x8x8xf32>,
    %cst_86 = arith.constant 0.000000e+00 : f32
    %65 = vector.broadcast %cst_86 : f32 to vector<64x8xf32>
    %c0_87 = arith.constant 0 : index
    %c0_88 = arith.constant 0 : index
    %c0_89 = arith.constant 0 : index
    %c0_90 = arith.constant 0 : index
    %66 = vector.load %arg7[%c0_87, %c0_88, %c0_89, %c0_90] : memref<1x10x10x8xf32, #tpu.memory_space<vmem>>, vector<1x8x8x8xf32>
    %67 = vector.shape_cast %66 : vector<1x8x8x8xf32> to vector<64x8xf32>
    %c0_91 = arith.constant 0 : index
    %c0_92 = arith.constant 0 : index
    %c0_93 = arith.constant 0 : index
    %68 = vector.load %arg4[%c0_91, %c0_92, %c0_93] : memref<9x8x8xf32, #tpu.memory_space<vmem>>, vector<1x8x8xf32>
    %69 = vector.shape_cast %68 : vector<1x8x8xf32> to vector<8x8xf32>
    %cst_94 = arith.constant dense<0.000000e+00> : vector<64x8xf32>
    %70 = tpu.matmul %67, %69, %cst_94 {dimension_numbers = #tpu.dot_dimension_numbers<[1], [0], [0], [1], [0, 0, 1, 1], [], []>} : vector<64x8xf32>, vector<8x8xf32>, vector<64x8xf32> -> vector<64x8xf32>
    %71 = arith.addf %65, %70 : vector<64x8xf32>
    %c0_95 = arith.constant 0 : index
    %c0_96 = arith.constant 0 : index
    %c1_97 = arith.constant 1 : index
    %c0_98 = arith.constant 0 : index
    %72 = vector.load %arg7[%c0_95, %c0_96, %c1_97, %c0_98] : memref<1x10x10x8xf32, #tpu.memory_space<vmem>>, vector<1x8x8x8xf32>
    %73 = vector.shape_cast %72 : vector<1x8x8x8xf32> to vector<64x8xf32>
    %c1_99 = arith.constant 1 : index
    %c0_100 = arith.constant 0 : index
    %c0_101 = arith.constant 0 : index
    %74 = vector.load %arg4[%c1_99, %c0_100, %c0_101] : memref<9x8x8xf32, #tpu.memory_space<vmem>>, vector<1x8x8xf32>
    %75 = vector.shape_cast %74 : vector<1x8x8xf32> to vector<8x8xf32>
    %cst_102 = arith.constant dense<0.000000e+00> : vector<64x8xf32>
    %76 = tpu.matmul %73, %75, %cst_102 {dimension_numbers = #tpu.dot_dimension_numbers<[1], [0], [0], [1], [0, 0, 1, 1], [], []>} : vector<64x8xf32>, vector<8x8xf32>, vector<64x8xf32> -> vector<64x8xf32>
    %77 = arith.addf %71, %76 : vector<64x8xf32>
    %c0_103 = arith.constant 0 : index
    %c0_104 = arith.constant 0 : index
    %c2_105 = arith.constant 2 : index
    %c0_106 = arith.constant 0 : index
    %78 = vector.load %arg7[%c0_103, %c0_104, %c2_105, %c0_106] : memref<1x10x10x8xf32, #tpu.memory_space<vmem>>, vector<1x8x8x8xf32>
    %79 = vector.shape_cast %78 : vector<1x8x8x8xf32> to vector<64x8xf32>
    %c2_107 = arith.constant 2 : index
    %c0_108 = arith.constant 0 : index
    %c0_109 = arith.constant 0 : index
    %80 = vector.load %arg4[%c2_107, %c0_108, %c0_109] : memref<9x8x8xf32, #tpu.memory_space<vmem>>, vector<1x8x8xf32>
    %81 = vector.shape_cast %80 : vector<1x8x8xf32> to vector<8x8xf32>
    %cst_110 = arith.constant dense<0.000000e+00> : vector<64x8xf32>
    %82 = tpu.matmul %79, %81, %cst_110 {dimension_numbers = #tpu.dot_dimension_numbers<[1], [0], [0], [1], [0, 0, 1, 1], [], []>} : vector<64x8xf32>, vector<8x8xf32>, vector<64x8xf32> -> vector<64x8xf32>
    %83 = arith.addf %77, %82 : vector<64x8xf32>
    %c0_111 = arith.constant 0 : index
    %c1_112 = arith.constant 1 : index
    %c0_113 = arith.constant 0 : index
    %c0_114 = arith.constant 0 : index
    %84 = vector.load %arg7[%c0_111, %c1_112, %c0_113, %c0_114] : memref<1x10x10x8xf32, #tpu.memory_space<vmem>>, vector<1x8x8x8xf32>
    %85 = vector.shape_cast %84 : vector<1x8x8x8xf32> to vector<64x8xf32>
    %c3_115 = arith.constant 3 : index
    %c0_116 = arith.constant 0 : index
    %c0_117 = arith.constant 0 : index
    %86 = vector.load %arg4[%c3_115, %c0_116, %c0_117] : memref<9x8x8xf32, #tpu.memory_space<vmem>>, vector<1x8x8xf32>
    %87 = vector.shape_cast %86 : vector<1x8x8xf32> to vector<8x8xf32>
    %cst_118 = arith.constant dense<0.000000e+00> : vector<64x8xf32>
    %88 = tpu.matmul %85, %87, %cst_118 {dimension_numbers = #tpu.dot_dimension_numbers<[1], [0], [0], [1], [0, 0, 1, 1], [], []>} : vector<64x8xf32>, vector<8x8xf32>, vector<64x8xf32> -> vector<64x8xf32>
    %89 = arith.addf %83, %88 : vector<64x8xf32>
    %c0_119 = arith.constant 0 : index
    %c1_120 = arith.constant 1 : index
    %c1_121 = arith.constant 1 : index
    %c0_122 = arith.constant 0 : index
    %90 = vector.load %arg7[%c0_119, %c1_120, %c1_121, %c0_122] : memref<1x10x10x8xf32, #tpu.memory_space<vmem>>, vector<1x8x8x8xf32>
    %91 = vector.shape_cast %90 : vector<1x8x8x8xf32> to vector<64x8xf32>
    %c4_123 = arith.constant 4 : index
    %c0_124 = arith.constant 0 : index
    %c0_125 = arith.constant 0 : index
    %92 = vector.load %arg4[%c4_123, %c0_124, %c0_125] : memref<9x8x8xf32, #tpu.memory_space<vmem>>, vector<1x8x8xf32>
    %93 = vector.shape_cast %92 : vector<1x8x8xf32> to vector<8x8xf32>
    %cst_126 = arith.constant dense<0.000000e+00> : vector<64x8xf32>
    %94 = tpu.matmul %91, %93, %cst_126 {dimension_numbers = #tpu.dot_dimension_numbers<[1], [0], [0], [1], [0, 0, 1, 1], [], []>} : vector<64x8xf32>, vector<8x8xf32>, vector<64x8xf32> -> vector<64x8xf32>
    %95 = arith.addf %89, %94 : vector<64x8xf32>
    %c0_127 = arith.constant 0 : index
    %c1_128 = arith.constant 1 : index
    %c2_129 = arith.constant 2 : index
    %c0_130 = arith.constant 0 : index
    %96 = vector.load %arg7[%c0_127, %c1_128, %c2_129, %c0_130] : memref<1x10x10x8xf32, #tpu.memory_space<vmem>>, vector<1x8x8x8xf32>
    %97 = vector.shape_cast %96 : vector<1x8x8x8xf32> to vector<64x8xf32>
    %c5_131 = arith.constant 5 : index
    %c0_132 = arith.constant 0 : index
    %c0_133 = arith.constant 0 : index
    %98 = vector.load %arg4[%c5_131, %c0_132, %c0_133] : memref<9x8x8xf32, #tpu.memory_space<vmem>>, vector<1x8x8xf32>
    %99 = vector.shape_cast %98 : vector<1x8x8xf32> to vector<8x8xf32>
    %cst_134 = arith.constant dense<0.000000e+00> : vector<64x8xf32>
    %100 = tpu.matmul %97, %99, %cst_134 {dimension_numbers = #tpu.dot_dimension_numbers<[1], [0], [0], [1], [0, 0, 1, 1], [], []>} : vector<64x8xf32>, vector<8x8xf32>, vector<64x8xf32> -> vector<64x8xf32>
    %101 = arith.addf %95, %100 : vector<64x8xf32>
    %c0_135 = arith.constant 0 : index
    %c2_136 = arith.constant 2 : index
    %c0_137 = arith.constant 0 : index
    %c0_138 = arith.constant 0 : index
    %102 = vector.load %arg7[%c0_135, %c2_136, %c0_137, %c0_138] : memref<1x10x10x8xf32, #tpu.memory_space<vmem>>, vector<1x8x8x8xf32>
    %103 = vector.shape_cast %102 : vector<1x8x8x8xf32> to vector<64x8xf32>
    %c6_139 = arith.constant 6 : index
    %c0_140 = arith.constant 0 : index
    %c0_141 = arith.constant 0 : index
    %104 = vector.load %arg4[%c6_139, %c0_140, %c0_141] : memref<9x8x8xf32, #tpu.memory_space<vmem>>, vector<1x8x8xf32>
    %105 = vector.shape_cast %104 : vector<1x8x8xf32> to vector<8x8xf32>
    %cst_142 = arith.constant dense<0.000000e+00> : vector<64x8xf32>
    %106 = tpu.matmul %103, %105, %cst_142 {dimension_numbers = #tpu.dot_dimension_numbers<[1], [0], [0], [1], [0, 0, 1, 1], [], []>} : vector<64x8xf32>, vector<8x8xf32>, vector<64x8xf32> -> vector<64x8xf32>
    %107 = arith.addf %101, %106 : vector<64x8xf32>
    %c0_143 = arith.constant 0 : index
    %c2_144 = arith.constant 2 : index
    %c1_145 = arith.constant 1 : index
    %c0_146 = arith.constant 0 : index
    %108 = vector.load %arg7[%c0_143, %c2_144, %c1_145, %c0_146] : memref<1x10x10x8xf32, #tpu.memory_space<vmem>>, vector<1x8x8x8xf32>
    %109 = vector.shape_cast %108 : vector<1x8x8x8xf32> to vector<64x8xf32>
    %c7_147 = arith.constant 7 : index
    %c0_148 = arith.constant 0 : index
    %c0_149 = arith.constant 0 : index
    %110 = vector.load %arg4[%c7_147, %c0_148, %c0_149] : memref<9x8x8xf32, #tpu.memory_space<vmem>>, vector<1x8x8xf32>
    %111 = vector.shape_cast %110 : vector<1x8x8xf32> to vector<8x8xf32>
    %cst_150 = arith.constant dense<0.000000e+00> : vector<64x8xf32>
    %112 = tpu.matmul %109, %111, %cst_150 {dimension_numbers = #tpu.dot_dimension_numbers<[1], [0], [0], [1], [0, 0, 1, 1], [], []>} : vector<64x8xf32>, vector<8x8xf32>, vector<64x8xf32> -> vector<64x8xf32>
    %113 = arith.addf %107, %112 : vector<64x8xf32>
    %c0_151 = arith.constant 0 : index
    %c2_152 = arith.constant 2 : index
    %c2_153 = arith.constant 2 : index
    %c0_154 = arith.constant 0 : index
    %114 = vector.load %arg7[%c0_151, %c2_152, %c2_153, %c0_154] : memref<1x10x10x8xf32, #tpu.memory_space<vmem>>, vector<1x8x8x8xf32>
    %115 = vector.shape_cast %114 : vector<1x8x8x8xf32> to vector<64x8xf32>
    %c8_155 = arith.constant 8 : index
    %c0_156 = arith.constant 0 : index
    %c0_157 = arith.constant 0 : index
    %116 = vector.load %arg4[%c8_155, %c0_156, %c0_157] : memref<9x8x8xf32, #tpu.memory_space<vmem>>, vector<1x8x8xf32>
    %117 = vector.shape_cast %116 : vector<1x8x8xf32> to vector<8x8xf32>
    %cst_158 = arith.constant dense<0.000000e+00> : vector<64x8xf32>
    %118 = tpu.matmul %115, %117, %cst_158 {dimension_numbers = #tpu.dot_dimension_numbers<[1], [0], [0], [1], [0, 0, 1, 1], [], []>} : vector<64x8xf32>, vector<8x8xf32>, vector<64x8xf32> -> vector<64x8xf32>
    %119 = arith.addf %113, %118 : vector<64x8xf32>
    %120 = vector.broadcast %1 : vector<1x8xf32> to vector<64x8xf32>
    %121 = arith.addf %119, %120 : vector<64x8xf32>
    %cst_159 = arith.constant 0.000000e+00 : f32
    %122 = vector.broadcast %cst_159 : f32 to vector<64x8xf32>
    %123 = arith.maximumf %121, %122 : vector<64x8xf32>
    %124 = vector.shape_cast %123 : vector<64x8xf32> to vector<1x8x8x8xf32>
    %c0_160 = arith.constant 0 : index
    %c0_161 = arith.constant 0 : index
    %c0_162 = arith.constant 0 : index
    %c0_163 = arith.constant 0 : index
    %125 = vector.load %arg6[%c0_160, %c0_161, %c0_162, %c0_163] : memref<1x8x8x8xf32, #tpu.memory_space<vmem>>, vector<1x8x8x8xf32>
    tpu.vector_store %arg6[%c0_160, %c0_161, %c0_162, %c0_163], %124 {strides = array<i32>} : memref<1x8x8x8xf32, #tpu.memory_space<vmem>>, vector<1x8x8x8xf32>,
    return
  }
  func.func @transform_0(%arg0: i32) -> (i32, i32, i32, i32, i32) {
    %c0_i32 = arith.constant 0 : i32
    %c0_i32_0 = arith.constant 0 : i32
    %c0_i32_1 = arith.constant 0 : i32
    %c0_i32_2 = arith.constant 0 : i32
    %c0_i32_3 = arith.constant 0 : i32
    return %arg0, %c0_i32, %c0_i32_0, %c0_i32_1, %c0_i32_2 : i32, i32, i32, i32, i32
  }
  func.func @transform_1(%arg0: i32) -> (i32, i32, i32) {
    %c0_i32 = arith.constant 0 : i32
    %c0_i32_0 = arith.constant 0 : i32
    %c0_i32_1 = arith.constant 0 : i32
    %c0_i32_2 = arith.constant 0 : i32
    return %c0_i32, %c0_i32_0, %c0_i32_1 : i32, i32, i32
  }
  func.func @transform_2(%arg0: i32) -> (i32, i32) {
    %c0_i32 = arith.constant 0 : i32
    %c0_i32_0 = arith.constant 0 : i32
    %c0_i32_1 = arith.constant 0 : i32
    return %c0_i32, %c0_i32_0 : i32, i32
  }
  func.func @transform_3(%arg0: i32) -> (i32, i32, i32) {
    %c0_i32 = arith.constant 0 : i32
    %c0_i32_0 = arith.constant 0 : i32
    %c0_i32_1 = arith.constant 0 : i32
    %c0_i32_2 = arith.constant 0 : i32
    return %c0_i32, %c0_i32_0, %c0_i32_1 : i32, i32, i32
  }
  func.func @transform_4(%arg0: i32) -> (i32, i32) {
    %c0_i32 = arith.constant 0 : i32
    %c0_i32_0 = arith.constant 0 : i32
    %c0_i32_1 = arith.constant 0 : i32
    return %c0_i32, %c0_i32_0 : i32, i32
  }
  func.func @transform_5(%arg0: i32) -> (i32, i32, i32, i32) {
    %c0_i32 = arith.constant 0 : i32
    %c0_i32_0 = arith.constant 0 : i32
    %c0_i32_1 = arith.constant 0 : i32
    %c0_i32_2 = arith.constant 0 : i32
    return %arg0, %c0_i32, %c0_i32_0, %c0_i32_1 : i32, i32, i32, i32
  }
}

</mosaic_0001>

<bundles_post_ra>
// kernel: _downsample_forward.1
= control target key start
LH: loop header
LB: loop body
LE: loop exit
PB: predicated region body
PF: predicated region fallthrough
CT: control target
= control target key end

     0   :  { %s3816_s18 = smov 0   ;;  %s4355_s0 = inlined_call_operand.vmem [shape: f32[2,9,2,9,8], index: 0, kind: input, shape index: {}]   ;;  %s4356_s1 = inlined_call_operand.vmem [shape: f32[9,4,8], index: 1, kind: input, shape index: {}]   ;;  %s4357_s2 = inlined_call_operand.vmem [shape: f32[1,8], index: 2, kind: input, shape index: {}]   ;;  %s4358_s3 = inlined_call_operand.vmem [shape: f32[9,8,8], index: 3, kind: input, shape index: {}]   ;;  %s4359_s4 = inlined_call_operand.vmem [shape: f32[1,8], index: 4, kind: input, shape index: {}]   ;;  %s4360_s5 = inlined_call_operand.vmem [shape: f32[2,8,8,8], index: 5, kind: output, shape index: {}]  }
   0x1 LB: > { %s3009_s19 = sadd.s32 4294967295, %s3782_s18   ;;  %p3013_p0 = scmp.ge.s32.totalorder %s3782_s18, 1  ;;  %s3782_s18 = sphi %s3816_s18, %s15_s18  }
   0x2   : > { %p187_p1 = scmp.lt.s32.totalorder %s3782_s18, 3 }
   0x4   : > { %p188_p2 = pnand %p3013_p0, %p187_p1 }
   0x5   : > { %p215_p3 = scmp.lt.s32.totalorder (!%p188_p2), %s3009_s19, 1  ;;  %v3017_v0 = vld [vmem:[%s4356_s1 + $0x4] sm:$0xf] (!%p188_p2)  ;;  %vm279_vm0 = vcmask (!%p188_p2), 1043456   ;;  %v235_v1 = vld [vmem:[%s4356_s1] sm:$0xf] (!%p188_p2) }
   0x6   : > { %191 = sbr.rel (%p188_p2) target bundleno = 848 (0x350), region = 40  ;;  %3385 = vmatprep.subr.msk.mxu0 (!%p188_p2), %vm279_vm0, %v3017_v0  ;;  %s3784_s28 = smov (!%p188_p2), 124   ;;  %vm262_vm1 = vcmask (!%p188_p2), 31744   ;;  %v3036_v23 = vld [vmem:[%s4356_s1 + $0x8] sm:$0xf] (!%p188_p2)  ;;  %vm1586_vm2 = vcmask (!%p188_p2), 64512  }
   0x7   : > { %3386 = vmatpush3.msk.msra.mxu0 (!%p188_p2), %vm279_vm0, %v3017_v0  ;;  %v3054_v28 = vld [vmem:[%s4356_s1 + $0xc] sm:$0xf] (!%p188_p2)  ;;  %v3064_v32 = vld [vmem:[%s4356_s1 + $0x10] sm:$0xf] (!%p188_p2)  ;;  %v3082_v38 = vld [vmem:[%s4356_s1 + $0x14] sm:$0xf] (!%p188_p2) }
   0x8   : > { %3399 = vmatprep.subr.msk.mxu0 (!%p188_p2), %vm279_vm0, %v235_v1  ;;  %v3100_v43 = vld [vmem:[%s4356_s1 + $0x18] sm:$0xf] (!%p188_p2)  ;;  %v3110_v51 = vld [vmem:[%s4356_s1 + $0x1c] sm:$0xf] (!%p188_p2)  ;;  %v3128_v57 = vld [vmem:[%s4356_s1 + $0x20] sm:$0xf] (!%p188_p2) }
   0x9   : > { %vm1588_vm3 = vcmask (!%p188_p2), 58368  }
   0xd   : > { %s4362_s19 = smov (!%p215_p3, %s3009_s19), 1 }
   0xe   : > { %s3765_s24 = smul.u32 288, %s4362_s19  ;;  %s3222_s17 = sshll.u32 %s4362_s19, 6 }
   0xf   : > { %s224_s22 = scalar_lea.vmem %s4360_s5, %s3222_s17 }
  0x10   : > { %s3839_s27 = scalar_lea.vmem %s4355_s0, %s3765_s24 }
  0x11   : > { %v227_v2 = vld [vmem:[%s3839_s27] sm:$0xff]  ;;  %v3879_v10 = vld [vmem:[%s3839_s27 + $0x10] sm:$0xff] }
  0x12   : > { %v3843_v3 = vld [vmem:[%s3839_s27 + $0x40] sm:$0xff]  ;;  %246 = vrot.lane.b32.xlu0 %v227_v2, %s3784_s28  ;;  %v3882_v11 = vld [vmem:[%s3839_s27 + $0x30] sm:$0xff] }
  0x13   : > { %250 = vrot.lane.b32.xlu1 %v3843_v3, %s3784_s28  ;;  %v3849_v4 = vld [vmem:[%s3839_s27 + $0x20] sm:$0xff]  ;;  %v3889_v12 = vld [vmem:[%s3839_s27 + $0x50] sm:$0xff] }
  0x14   : > { %v3852_v5 = vld [vmem:[%s3839_s27 + $0x60] sm:$0xff]  ;;  %v3892_v13 = vld [vmem:[%s3839_s27 + $0x70] sm:$0xff] }
  0x15   : > { %v3859_v6 = vld [vmem:[%s3839_s27 + $0x80] sm:$0xff]  ;;  %v3899_v14 = vld [vmem:[%s3839_s27 + $0x90] sm:$0xff] }
  0x16   : > { %248 = vrot.lane.b32.xlu0 %v3849_v4, %s3784_s28  ;;  %v3862_v7 = vld [vmem:[%s3839_s27 + $0xa0] sm:$0xff]  ;;  %v3902_v15 = vld [vmem:[%s3839_s27 + $0xb0] sm:$0xff] }
  0x17   : > { %252 = vrot.lane.b32.xlu1 %v3852_v5, %s3784_s28  ;;  %v3869_v8 = vld [vmem:[%s3839_s27 + $0xc0] sm:$0xff]  ;;  %v3909_v16 = vld [vmem:[%s3839_s27 + $0xd0] sm:$0xff] }
  0x18   : > { %v3872_v9 = vld [vmem:[%s3839_s27 + $0xe0] sm:$0xff]  ;;  %v3912_v17 = vld [vmem:[%s3839_s27 + $0xf0] sm:$0xff] }
  0x19   : > { %v3931_v18 = vld [vmem:[%s3839_s27 + $0x100] sm:$0xff]  ;;  %v3074_v48 = vld [vmem:[%s3839_s27 + $0x11] sm:$0xff] }
  0x1a   : > { %254 = vrot.lane.b32.xlu0 %v3859_v6, %s3784_s28  ;;  %v512_v29 = vld [vmem:[%s3839_s27 + $0x1] sm:$0xff]  ;;  %v3075_v49 = vld [vmem:[%s3839_s27 + $0x31] sm:$0xff] }
  0x1b   : > { %256 = vrot.lane.b32.xlu1 %v3862_v7, %s3784_s28  ;;  %v3973_v30 = vld [vmem:[%s3839_s27 + $0x21] sm:$0xff]  ;;  %v3076_v50 = vld [vmem:[%s3839_s27 + $0x51] sm:$0xff] }
  0x1c   : > { %v3976_v31 = vld [vmem:[%s3839_s27 + $0x41] sm:$0xff]  ;;  %v3077_v52 = vld [vmem:[%s3839_s27 + $0x71] sm:$0xff] }
  0x1d   : > { %v3987_v33 = vld [vmem:[%s3839_s27 + $0x61] sm:$0xff]  ;;  %v3078_v53 = vld [vmem:[%s3839_s27 + $0x91] sm:$0xff] }
  0x1e   : > { %258 = vrot.lane.b32.xlu0 %v3869_v8, %s3784_s28  ;;  %v3990_v34 = vld [vmem:[%s3839_s27 + $0x81] sm:$0xff]  ;;  %v3079_v54 = vld [vmem:[%s3839_s27 + $0xb1] sm:$0xff] }
  0x1f   : > { %260 = vrot.lane.b32.xlu1 %v3872_v9, %s3784_s28  ;;  %v3998_v35 = vld [vmem:[%s3839_s27 + $0xa1] sm:$0xff]  ;;  %v3080_v55 = vld [vmem:[%s3839_s27 + $0xd1] sm:$0xff] }
  0x20   : > { %v4001_v36 = vld [vmem:[%s3839_s27 + $0xc1] sm:$0xff]  ;;  %v3081_v56 = vld [vmem:[%s3839_s27 + $0xf1] sm:$0xff] }
  0x21   : > { %v4008_v37 = vld [vmem:[%s3839_s27 + $0xe1] sm:$0xff] }
  0x22   : > { %815 = vrot.lane.b32.xlu0 %v3879_v10, %s3784_s28 }
  0x23   : > { %817 = vrot.lane.b32.xlu1 %v3882_v11, %s3784_s28 }
  0x26   : > { %819 = vrot.lane.b32.xlu0 %v3889_v12, %s3784_s28 }
  0x27   : > { %821 = vrot.lane.b32.xlu1 %v3892_v13, %s3784_s28 }
  0x2a   : > { %823 = vrot.lane.b32.xlu0 %v3899_v14, %s3784_s28 }
  0x2b   : > { %825 = vrot.lane.b32.xlu1 %v3902_v15, %s3784_s28 }
  0x2e   : > { %827 = vrot.lane.b32.xlu0 %v3909_v16, %s3784_s28 }
  0x2f   : > { %829 = vrot.lane.b32.xlu1 %v3912_v17, %s3784_s28 }
  0x32   : > { %1266 = vrot.lane.b32.xlu0 %v3849_v4, %s3784_s28 }
  0x33   : > { %1268 = vrot.lane.b32.xlu1 %v3843_v3, %s3784_s28 }
  0x36   : > { %1270 = vrot.lane.b32.xlu0 %v3852_v5, %s3784_s28 }
  0x37   : > { %1272 = vrot.lane.b32.xlu1 %v3859_v6, %s3784_s28 }
  0x3a   : > { %1274 = vrot.lane.b32.xlu0 %v3862_v7, %s3784_s28 }
  0x3b   : > { %1276 = vrot.lane.b32.xlu1 %v3869_v8, %s3784_s28 }
  0x3e   : > { %1278 = vrot.lane.b32.xlu0 %v3872_v9, %s3784_s28 }
  0x3f   : > { %1280 = vrot.lane.b32.xlu1 %v3931_v18, %s3784_s28 }
  0x84   : > { %v247_v19 = vpop.permute.xlu0 %246 }
  0x85   : > { %v251_v20 = vpop.permute.xlu1 %250  ;;  %3387 = vmatprep.mubr.msk.f32.mxu0 %vm262_vm1, %v247_v19 }
  0x88   : > { %v249_v21 = vpop.permute.xlu0 %248 }
  0x89   : > { %v253_v22 = vpop.permute.xlu1 %252  ;;  %3388 = vmatmul.mubr.msk.f32.vlgmr.msra.gmra.mrb[0].mxu0 %vm262_vm1, %v249_v21 }
  0x8a   : > { %3400 = vmatpush3.msk.msra.mxu0 %vm279_vm0, %v235_v1  ;;  %3390 = vmatprep.mubr.msk.f32.mxu0 %vm262_vm1, %v251_v20 }
  0x8b   : > { %3413 = vmatprep.subr.msk.mxu0 %vm279_vm0, %v3036_v23 }
  0x8c   : > { %v255_v24 = vpop.permute.xlu0 %254 }
  0x8d   : > { %v257_v25 = vpop.permute.xlu1 %256  ;;  %3391 = vmatmul.mubr.msk.f32.gmra.mrb[2].mxu0 %vm262_vm1, %v253_v22 }
  0x8e   : > { %3393 = vmatprep.mubr.msk.f32.mxu0 %vm262_vm1, %v255_v24 }
  0x90   : > { %v259_v26 = vpop.permute.xlu0 %258 }
  0x91   : > { %3394 = vmatmul.mubr.msk.f32.gmra.mrb[4].mxu0 %vm262_vm1, %v257_v25  ;;  %v261_v27 = vpop.permute.xlu1 %260 }
  0x92   : > { %3396 = vmatprep.mubr.msk.f32.mxu0 %vm262_vm1, %v259_v26 }
  0x94   : > { %v816_v39 = vpop.permute.xlu0 %815 }
  0x95   : > { %3397 = vmatmul.mubr.msk.f32.gmra.mrb[6].mxu0 %vm262_vm1, %v261_v27  ;;  %v818_v40 = vpop.permute.xlu1 %817 }
  0x96   : > { %3401 = vmatprep.mubr.msk.f32.mxu0 %vm262_vm1, %v227_v2  ;;  %v3127_v2 = vld [vmem:[%s3839_s27 + $0x101] sm:$0xff] }
  0x98   : > { %v820_v41 = vpop.permute.xlu0 %819 }
  0x99   : > { %3402 = vmatmul.mubr.msk.f32.vlgmr.msra.gmra.mrb[0].mxu0 %vm262_vm1, %v3849_v4  ;;  %v822_v42 = vpop.permute.xlu1 %821 }
  0x9a   : > { %3414 = vmatpush3.msk.msra.mxu0 %vm279_vm0, %v3036_v23  ;;  %3404 = vmatprep.mubr.msk.f32.mxu0 %vm262_vm1, %v3843_v3 }
  0x9b   : > { %3427 = vmatprep.subr.msk.mxu0 %vm279_vm0, %v3054_v28 }
  0x9c   : > { %v824_v44 = vpop.permute.xlu0 %823 }
  0x9d   : > { %3405 = vmatmul.mubr.msk.f32.gmra.mrb[2].mxu0 %vm262_vm1, %v3852_v5  ;;  %v826_v45 = vpop.permute.xlu1 %825 }
  0x9e   : > { %3407 = vmatprep.mubr.msk.f32.mxu0 %vm262_vm1, %v3859_v6 }
  0xa0   : > { %v828_v46 = vpop.permute.xlu0 %827 }
  0xa1   : > { %3408 = vmatmul.mubr.msk.f32.gmra.mrb[4].mxu0 %vm262_vm1, %v3862_v7  ;;  %v830_v47 = vpop.permute.xlu1 %829 }
  0xa2   : > { %3410 = vmatprep.mubr.msk.f32.mxu0 %vm262_vm1, %v3869_v8 }
  0xa4   : > { %v1267_v58 = vpop.permute.xlu0 %1266 }
  0xa5   : > { %3411 = vmatmul.mubr.msk.f32.gmra.mrb[6].mxu0 %vm262_vm1, %v3872_v9  ;;  %v1269_v59 = vpop.permute.xlu1 %1268 }
  0xa6   : > { %3415 = vmatprep.mubr.msk.f32.mxu0 %vm262_vm1, %v512_v29 }
  0xa8   : > { %v1271_v60 = vpop.permute.xlu0 %1270 }
  0xa9   : > { %3416 = vmatmul.mubr.msk.f32.vlgmr.msra.gmra.mrb[0].mxu0 %vm262_vm1, %v3973_v30  ;;  %v1273_v61 = vpop.permute.xlu1 %1272 }
  0xaa   : > { %3428 = vmatpush3.msk.msra.mxu0 %vm279_vm0, %v3054_v28  ;;  %3418 = vmatprep.mubr.msk.f32.mxu0 %vm262_vm1, %v3976_v31 }
  0xab   : > { %3441 = vmatprep.subr.msk.mxu0 %vm279_vm0, %v3064_v32 }
  0xac   : > { %v1275_v62 = vpop.permute.xlu0 %1274 }
  0xad   : > { %3419 = vmatmul.mubr.msk.f32.gmra.mrb[2].mxu0 %vm262_vm1, %v3987_v33  ;;  %v1277_v63 = vpop.permute.xlu1 %1276 }
  0xae   : > { %3421 = vmatprep.mubr.msk.f32.mxu0 %vm262_vm1, %v3990_v34 }
  0xb0   : > { %v1279_v0 = vpop.permute.xlu0 %1278 }
  0xb1   : > { %3422 = vmatmul.mubr.msk.f32.gmra.mrb[4].mxu0 %vm262_vm1, %v3998_v35  ;;  %v1281_v1 = vpop.permute.xlu1 %1280 }
  0xb2   : > { %3424 = vmatprep.mubr.msk.f32.mxu0 %vm262_vm1, %v4001_v36 }
  0xb5   : > { %3425 = vmatmul.mubr.msk.f32.gmra.mrb[6].mxu0 %vm262_vm1, %v4008_v37 }
  0xb6   : > { %3429 = vmatprep.mubr.msk.f32.mxu0 %vm262_vm1, %v3879_v10 }
  0xb9   : > { %3430 = vmatmul.mubr.msk.f32.vlgmr.msra.gmra.mrb[0].mxu0 %vm262_vm1, %v3882_v11 }
  0xba   : > { %3442 = vmatpush3.msk.msra.mxu0 %vm279_vm0, %v3064_v32  ;;  %3432 = vmatprep.mubr.msk.f32.mxu0 %vm262_vm1, %v3889_v12 }
  0xbb   : > { %3455 = vmatprep.subr.msk.mxu0 %vm279_vm0, %v3082_v38 }
  0xbd   : > { %3433 = vmatmul.mubr.msk.f32.gmra.mrb[2].mxu0 %vm262_vm1, %v3892_v13 }
  0xbe   : > { %3435 = vmatprep.mubr.msk.f32.mxu0 %vm262_vm1, %v3899_v14 }
  0xc1   : > { %3436 = vmatmul.mubr.msk.f32.gmra.mrb[4].mxu0 %vm262_vm1, %v3902_v15 }
  0xc2   : > { %3438 = vmatprep.mubr.msk.f32.mxu0 %vm262_vm1, %v3909_v16 }
  0xc5   : > { %3439 = vmatmul.mubr.msk.f32.gmra.mrb[6].mxu0 %vm262_vm1, %v3912_v17 }
  0xc6   : > { %3443 = vmatprep.mubr.msk.f32.mxu0 %vm262_vm1, %v816_v39 }
  0xc9   : > { %3444 = vmatmul.mubr.msk.f32.vlgmr.msra.gmra.mrb[0].mxu0 %vm262_vm1, %v818_v40 }
  0xca   : > { %3456 = vmatpush3.msk.msra.mxu0 %vm279_vm0, %v3082_v38  ;;  %3446 = vmatprep.mubr.msk.f32.mxu0 %vm262_vm1, %v820_v41 }
  0xcb   : > { %3469 = vmatprep.subr.msk.mxu0 %vm279_vm0, %v3100_v43 }
  0xcd   : > { %3447 = vmatmul.mubr.msk.f32.gmra.mrb[2].mxu0 %vm262_vm1, %v822_v42  ;;  %v3165_v42 = vld [vmem:[%s4358_s3 + $0x18] sm:$0xff] }
  0xce   : > { %3449 = vmatprep.mubr.msk.f32.mxu0 %vm262_vm1, %v824_v44 }
  0xd1   : > { %3450 = vmatmul.mubr.msk.f32.gmra.mrb[4].mxu0 %vm262_vm1, %v826_v45 }
  0xd2   : > { %3452 = vmatprep.mubr.msk.f32.mxu0 %vm262_vm1, %v828_v46 }
  0xd5   : > { %3453 = vmatmul.mubr.msk.f32.gmra.mrb[6].mxu0 %vm262_vm1, %v830_v47 }
  0xd6   : > { %3457 = vmatprep.mubr.msk.f32.mxu0 %vm262_vm1, %v3074_v48 }
  0xd9   : > { %3458 = vmatmul.mubr.msk.f32.vlgmr.msra.gmra.mrb[0].mxu0 %vm262_vm1, %v3075_v49 }
  0xda   : > { %3470 = vmatpush3.msk.msra.mxu0 %vm279_vm0, %v3100_v43  ;;  %3460 = vmatprep.mubr.msk.f32.mxu0 %vm262_vm1, %v3076_v50 }
  0xdb   : > { %3483 = vmatprep.subr.msk.mxu0 %vm279_vm0, %v3110_v51 }
  0xdd   : > { %3461 = vmatmul.mubr.msk.f32.gmra.mrb[2].mxu0 %vm262_vm1, %v3077_v52 }
  0xde   : > { %3463 = vmatprep.mubr.msk.f32.mxu0 %vm262_vm1, %v3078_v53 }
  0xe1   : > { %3464 = vmatmul.mubr.msk.f32.gmra.mrb[4].mxu0 %vm262_vm1, %v3079_v54 }
  0xe2   : > { %3466 = vmatprep.mubr.msk.f32.mxu0 %vm262_vm1, %v3080_v55 }
  0xe5   : > { %3467 = vmatmul.mubr.msk.f32.gmra.mrb[6].mxu0 %vm262_vm1, %v3081_v56 }
  0xe6   : > { %3471 = vmatprep.mubr.msk.f32.mxu0 %vm262_vm1, %v3849_v4  ;;  %v3139_v4 = vld [vmem:[%s4358_s3 + $0x8] sm:$0xff] }
  0xe7   : > { %3511 = vmatprep.subr.mxu1 %v3139_v4 }
  0xe8   : > { %3512 = vmatpush3.msra.mxu1 %v3139_v4  ;;  %v3219_v4 = vld [vmem:[%s4359_s4] ss:$0 sm:$0xff] }
  0xe9   : > { %3472 = vmatmul.mubr.msk.f32.vlgmr.msra.gmra.mrb[0].mxu0 %vm262_vm1, %v3843_v3  ;;  %v3785_v3 = vmov 0.0  }
  0xea   : > { %3484 = vmatpush3.msk.msra.mxu0 %vm279_vm0, %v3110_v51  ;;  %3474 = vmatprep.mubr.msk.f32.mxu0 %vm262_vm1, %v3852_v5  ;;  %1592 = vst.msk [vmem:[#allocation2 + $0x20] sm:$0xff] %vm1586_vm2, %v3785_v3  ;;  %1587 = vst.msk [vmem:[#allocation2] sm:$0xff] %vm1586_vm2, %v3785_v3  ;;  %v3174_v51 = vld [vmem:[%s4358_s3 + $0x20] sm:$0xff] }
  0xeb   : > { %3497 = vmatprep.subr.msk.mxu0 %vm279_vm0, %v3128_v57  ;;  %1593 = vst.msk [vmem:[#allocation2 + $0x28] sm:$0x3] %vm1588_vm3, %v3785_v3  ;;  %1589 = vst.msk [vmem:[#allocation2 + $0x8] sm:$0x3] %vm1588_vm3, %v3785_v3 }
  0xec   : > { %1590 = vst.msk [vmem:[#allocation2 + $0x10] sm:$0xff] %vm1586_vm2, %v3785_v3  ;;  %1594 = vst.msk [vmem:[#allocation2 + $0x30] sm:$0xff] %vm1586_vm2, %v3785_v3 }
  0xed   : > { %3475 = vmatmul.mubr.msk.f32.gmra.mrb[2].mxu0 %vm262_vm1, %v3859_v6  ;;  %1591 = vst.msk [vmem:[#allocation2 + $0x18] sm:$0x3] %vm1588_vm3, %v3785_v3  ;;  %1595 = vst.msk [vmem:[#allocation2 + $0x38] sm:$0x3] %vm1588_vm3, %v3785_v3  ;;  %v1625_v6 = vld [vmem:[%s4358_s3] sm:$0xff] }
  0xee   : > { %3477 = vmatprep.mubr.msk.f32.mxu0 %vm262_vm1, %v3862_v7  ;;  %1596 = vst.msk [vmem:[#allocation2 + $0x40] sm:$0xff] %vm1586_vm2, %v3785_v3  ;;  %1598 = vst.msk [vmem:[#allocation2 + $0x50] sm:$0xff] %vm1586_vm2, %v3785_v3  ;;  %3525 = vmatprep.subr.mxu1 %v1625_v6  ;;  %v3138_v7 = vld [vmem:[%s4357_s2] ss:$0 sm:$0xff] }
  0xef   : > { %1597 = vst.msk [vmem:[#allocation2 + $0x48] sm:$0x3] %vm1588_vm3, %v3785_v3  ;;  %1599 = vst.msk [vmem:[#allocation2 + $0x58] sm:$0x3] %vm1588_vm3, %v3785_v3 }
  0xf0   : > { %1600 = vst.msk [vmem:[#allocation2 + $0x60] sm:$0xff] %vm1586_vm2, %v3785_v3  ;;  %1602 = vst.msk [vmem:[#allocation2 + $0x70] sm:$0xff] %vm1586_vm2, %v3785_v3 }
  0xf1   : > { %3478 = vmatmul.mubr.msk.f32.gmra.mrb[4].mxu0 %vm262_vm1, %v3869_v8  ;;  %1601 = vst.msk [vmem:[#allocation2 + $0x68] sm:$0x3] %vm1588_vm3, %v3785_v3  ;;  %1603 = vst.msk [vmem:[#allocation2 + $0x78] sm:$0x3] %vm1588_vm3, %v3785_v3  ;;  %v1617_v39 = vld [vmem:[#allocation2] sm:$0xff] }
  0xf2   : > { %3480 = vmatprep.mubr.msk.f32.mxu0 %vm262_vm1, %v3872_v9  ;;  %1604 = vst.msk [vmem:[#allocation2 + $0x80] sm:$0xff] %vm1586_vm2, %v3785_v3  ;;  %1606 = vst.msk [vmem:[#allocation2 + $0x90] sm:$0xff] %vm1586_vm2, %v3785_v3  ;;  %v1626_v5 = vld [vmem:[#allocation2 + $0x1] sm:$0xff] }
  0xf3   : > { %1605 = vst.msk [vmem:[#allocation2 + $0x88] sm:$0x3] %vm1588_vm3, %v3785_v3  ;;  %1607 = vst.msk [vmem:[#allocation2 + $0x98] sm:$0x3] %vm1588_vm3, %v3785_v3  ;;  %3513 = vmatprep.mubr.msk.f32.mxu1 %vm1586_vm2, %v1626_v5  ;;  %v1894_v48 = vld [vmem:[#allocation2 + $0x2] sm:$0xff] }
  0xf5   : > { %3481 = vmatmul.mubr.msk.f32.gmra.mrb[6].mxu0 %vm262_vm1, %v3931_v18 }
  0xf6   : > { %3485 = vmatprep.mubr.msk.f32.mxu0 %vm262_vm1, %v1267_v58  ;;  %v3183_v58 = vld [vmem:[%s4358_s3 + $0x28] sm:$0xff] }
  0xf9   : > { %3486 = vmatmul.mubr.msk.f32.vlgmr.msra.gmra.mrb[0].mxu0 %vm262_vm1, %v1269_v59 }
  0xfa   : > { %3498 = vmatpush3.msk.msra.mxu0 %vm279_vm0, %v3128_v57  ;;  %3488 = vmatprep.mubr.msk.f32.mxu0 %vm262_vm1, %v1271_v60  ;;  %v3192_v60 = vld [vmem:[%s4358_s3 + $0x30] sm:$0xff] }
  0xfb   : > { %v2784_v3 = vld [vmem:[#allocation2 + $0x92] sm:$0xff] }
  0xfd   : > { %3489 = vmatmul.mubr.msk.f32.gmra.mrb[2].mxu0 %vm262_vm1, %v1273_v61 }
  0xfe   : > { %3491 = vmatprep.mubr.msk.f32.mxu0 %vm262_vm1, %v1275_v62  ;;  %v3201_v62 = vld [vmem:[%s4358_s3 + $0x38] sm:$0xff] }
 0x101   : > { %3492 = vmatmul.mubr.msk.f32.gmra.mrb[4].mxu0 %vm262_vm1, %v1277_v63 }
 0x102   : > { %3494 = vmatprep.mubr.msk.f32.mxu0 %vm262_vm1, %v1279_v0  ;;  %v3210_v0 = vld [vmem:[%s4358_s3 + $0x40] sm:$0xff] }
 0x105   : > { %3495 = vmatmul.mubr.msk.f32.gmra.mrb[6].mxu0 %vm262_vm1, %v1281_v1  ;;  %v2490_v1 = vld [vmem:[#allocation2 + $0x90] sm:$0xff] }
 0x106   : > { %3499 = vmatprep.mubr.msk.f32.mxu0 %vm262_vm1, %v3973_v30  ;;  %v3156_v30 = vld [vmem:[%s4358_s3 + $0x10] sm:$0xff] }
 0x109   : > { %3500 = vmatmul.mubr.msk.f32.vlgmr.msra.gmra.mrb[0].mxu0 %vm262_vm1, %v3976_v31 }
 0x10a   : > { %3502 = vmatprep.mubr.msk.f32.mxu0 %vm262_vm1, %v3987_v33 }
 0x10d   : > { %3503 = vmatmul.mubr.msk.f32.gmra.mrb[2].mxu0 %vm262_vm1, %v3990_v34 }
 0x10e   : > { %3505 = vmatprep.mubr.msk.f32.mxu0 %vm262_vm1, %v3998_v35 }
 0x111   : > { %3506 = vmatmul.mubr.msk.f32.gmra.mrb[4].mxu0 %vm262_vm1, %v4001_v36 }
 0x112   : > { %3508 = vmatprep.mubr.msk.f32.mxu0 %vm262_vm1, %v4008_v37 }
 0x115   : > { %3509 = vmatmul.mubr.msk.f32.gmra.mrb[6].mxu0 %vm262_vm1, %v3127_v2  ;;  %v2637_v2 = vld [vmem:[#allocation2 + $0x91] sm:$0xff] }
 0x1dc   : > { %v3501_v8 = vpop.f32.mrb[0].mxu0 }
 0x1dd   : > { %v1571_v9 = vadd.f32 %v3501_v8, %v3138_v7  ;;  %v1517_v10 = vpop.f32.mrb[1].mxu0 }
 0x1de   : > { %v1570_v11 = vadd.f32 %v3138_v7, %v1517_v10 }
 0x1df   : > { %v1579_v12 = vmax.f32 %v1571_v9, 0.0 }
 0x1e0   : > { %v1578_v13 = vmax.f32 %v1570_v11, 0.0  ;;  %v3504_v14 = vpop.f32.mrb[2].mxu0 }
 0x1e1   : > { %1610 = vst.msk [vmem:[#allocation2 + $0x21] sm:$0xff] %vm1586_vm2, %v1579_v12  ;;  %v1573_v15 = vadd.f32 %v3504_v14, %v3138_v7  ;;  %v1527_v16 = vpop.f32.mrb[3].mxu0 }
 0x1e2   : > { %1609 = vst.msk [vmem:[#allocation2 + $0x11] sm:$0xff] %vm1586_vm2, %v1578_v13  ;;  %v1572_v17 = vadd.f32 %v3138_v7, %v1527_v16 }
 0x1e3   : > { %v1581_v18 = vmax.f32 %v1573_v15, 0.0 }
 0x1e4   : > { %v1580_v19 = vmax.f32 %v1572_v17, 0.0  ;;  %v3507_v20 = vpop.f32.mrb[4].mxu0 }
 0x1e5   : > { %1612 = vst.msk [vmem:[#allocation2 + $0x41] sm:$0xff] %vm1586_vm2, %v1581_v18  ;;  %v1575_v21 = vadd.f32 %v3507_v20, %v3138_v7  ;;  %v1537_v22 = vpop.f32.mrb[5].mxu0 }
 0x1e6   : > { %1611 = vst.msk [vmem:[#allocation2 + $0x31] sm:$0xff] %vm1586_vm2, %v1580_v19  ;;  %v1574_v23 = vadd.f32 %v3138_v7, %v1537_v22 }
 0x1e7   : > { %v1583_v24 = vmax.f32 %v1575_v21, 0.0 }
 0x1e8   : > { %v1582_v25 = vmax.f32 %v1574_v23, 0.0  ;;  %v3510_v26 = vpop.f32.mrb[6].mxu0  ;;  %v4156_v32 = vld [vmem:[#allocation2 + $0x21] sm:$0xff] }
 0x1e9   : > { %1614 = vst.msk [vmem:[#allocation2 + $0x61] sm:$0xff] %vm1586_vm2, %v1583_v24  ;;  %v1577_v27 = vadd.f32 %v3510_v26, %v3138_v7  ;;  %v1547_v28 = vpop.f32.mrb[7].mxu0  ;;  %v4148_v29 = vld [vmem:[#allocation2 + $0x11] sm:$0xff]  ;;  %v4187_v43 = vld [vmem:[#allocation2 + $0x20] sm:$0xff] }
 0x1ea   : > { %1613 = vst.msk [vmem:[#allocation2 + $0x51] sm:$0xff] %vm1586_vm2, %v1582_v25  ;;  %v1576_v31 = vadd.f32 %v3138_v7, %v1547_v28  ;;  %3514 = vmatmul.mubr.msk.f32.vlgmr.msra.gmra.mrb[0].mxu1 %vm1586_vm2, %v4148_v29  ;;  %v1618_v41 = vld [vmem:[#allocation2 + $0x10] sm:$0xff]  ;;  %v4216_v52 = vld [vmem:[#allocation2 + $0x22] sm:$0xff] }
 0x1eb   : > { %v1585_v33 = vmax.f32 %v1577_v27, 0.0  ;;  %3526 = vmatpush3.msra.mxu1 %v1625_v6  ;;  %3516 = vmatprep.mubr.msk.f32.mxu1 %vm1586_vm2, %v4156_v32  ;;  %v1895_v50 = vld [vmem:[#allocation2 + $0x12] sm:$0xff] }
 0x1ec   : > { %v1584_v34 = vmax.f32 %v1576_v31, 0.0  ;;  %3539 = vmatprep.subr.mxu1 %v3156_v30  ;;  %v4166_v36 = vld [vmem:[#allocation2 + $0x41] sm:$0xff] }
 0x1ed   : > { %1616 = vst.msk [vmem:[#allocation2 + $0x81] sm:$0xff] %vm1586_vm2, %v1585_v33  ;;  %v4161_v35 = vld [vmem:[#allocation2 + $0x31] sm:$0xff]  ;;  %v4195_v45 = vld [vmem:[#allocation2 + $0x40] sm:$0xff] }
 0x1ee   : > { %1615 = vst.msk [vmem:[#allocation2 + $0x71] sm:$0xff] %vm1586_vm2, %v1584_v34  ;;  %3517 = vmatmul.mubr.msk.f32.gmra.mrb[2].mxu1 %vm1586_vm2, %v4161_v35  ;;  %v4191_v44 = vld [vmem:[#allocation2 + $0x30] sm:$0xff]  ;;  %v4224_v54 = vld [vmem:[#allocation2 + $0x42] sm:$0xff] }
 0x1ef   : > { %3519 = vmatprep.mubr.msk.f32.mxu1 %vm1586_vm2, %v4166_v36  ;;  %v4220_v53 = vld [vmem:[#allocation2 + $0x32] sm:$0xff] }
 0x1f0   : > { %v4174_v38 = vld [vmem:[#allocation2 + $0x61] sm:$0xff] }
 0x1f1   : > { %v4170_v37 = vld [vmem:[#allocation2 + $0x51] sm:$0xff]  ;;  %v4203_v47 = vld [vmem:[#allocation2 + $0x60] sm:$0xff] }
 0x1f2   : > { %3520 = vmatmul.mubr.msk.f32.gmra.mrb[4].mxu1 %vm1586_vm2, %v4170_v37  ;;  %v4199_v46 = vld [vmem:[#allocation2 + $0x50] sm:$0xff]  ;;  %v4232_v56 = vld [vmem:[#allocation2 + $0x62] sm:$0xff] }
 0x1f3   : > { %3522 = vmatprep.mubr.msk.f32.mxu1 %vm1586_vm2, %v4174_v38  ;;  %v4228_v55 = vld [vmem:[#allocation2 + $0x52] sm:$0xff] }
 0x1f4   : > { %v2048_v59 = vld [vmem:[#allocation2 + $0x80] sm:$0xff] }
 0x1f5   : > { %v4178_v40 = vld [vmem:[#allocation2 + $0x71] sm:$0xff]  ;;  %v2195_v61 = vld [vmem:[#allocation2 + $0x81] sm:$0xff] }
 0x1f6   : > { %3523 = vmatmul.mubr.msk.f32.gmra.mrb[6].mxu1 %vm1586_vm2, %v4178_v40  ;;  %v4207_v49 = vld [vmem:[#allocation2 + $0x70] sm:$0xff]  ;;  %v2342_v63 = vld [vmem:[#allocation2 + $0x82] sm:$0xff] }
 0x1f7   : > { %3527 = vmatprep.mubr.msk.f32.mxu1 %vm1586_vm2, %v1617_v39  ;;  %v4236_v57 = vld [vmem:[#allocation2 + $0x72] sm:$0xff] }
 0x1fa   : > { %3528 = vmatmul.mubr.msk.f32.vlgmr.msra.gmra.mrb[0].mxu1 %vm1586_vm2, %v1618_v41 }
 0x1fb   : > { %3540 = vmatpush3.msra.mxu1 %v3156_v30  ;;  %3530 = vmatprep.mubr.msk.f32.mxu1 %vm1586_vm2, %v4187_v43 }
 0x1fc   : > { %3553 = vmatprep.subr.mxu1 %v3165_v42 }
 0x1fe   : > { %3531 = vmatmul.mubr.msk.f32.gmra.mrb[2].mxu1 %vm1586_vm2, %v4191_v44 }
 0x1ff   : > { %3533 = vmatprep.mubr.msk.f32.mxu1 %vm1586_vm2, %v4195_v45 }
 0x202   : > { %3534 = vmatmul.mubr.msk.f32.gmra.mrb[4].mxu1 %vm1586_vm2, %v4199_v46 }
 0x203   : > { %3536 = vmatprep.mubr.msk.f32.mxu1 %vm1586_vm2, %v4203_v47 }
 0x206   : > { %3537 = vmatmul.mubr.msk.f32.gmra.mrb[6].mxu1 %vm1586_vm2, %v4207_v49 }
 0x207   : > { %3541 = vmatprep.mubr.msk.f32.mxu1 %vm1586_vm2, %v1894_v48 }
 0x20a   : > { %3542 = vmatmul.mubr.msk.f32.vlgmr.msra.gmra.mrb[0].mxu1 %vm1586_vm2, %v1895_v50 }
 0x20b   : > { %3554 = vmatpush3.msra.mxu1 %v3165_v42  ;;  %3544 = vmatprep.mubr.msk.f32.mxu1 %vm1586_vm2, %v4216_v52 }
 0x20c   : > { %3567 = vmatprep.subr.mxu1 %v3174_v51 }
 0x20e   : > { %3545 = vmatmul.mubr.msk.f32.gmra.mrb[2].mxu1 %vm1586_vm2, %v4220_v53 }
 0x20f   : > { %3547 = vmatprep.mubr.msk.f32.mxu1 %vm1586_vm2, %v4224_v54 }
 0x212   : > { %3548 = vmatmul.mubr.msk.f32.gmra.mrb[4].mxu1 %vm1586_vm2, %v4228_v55 }
 0x213   : > { %3550 = vmatprep.mubr.msk.f32.mxu1 %vm1586_vm2, %v4232_v56 }
 0x216   : > { %3551 = vmatmul.mubr.msk.f32.gmra.mrb[6].mxu1 %vm1586_vm2, %v4236_v57 }
 0x217   : > { %3555 = vmatprep.mubr.msk.f32.mxu1 %vm1586_vm2, %v1618_v41 }
 0x21a   : > { %3556 = vmatmul.mubr.msk.f32.vlgmr.msra.gmra.mrb[0].mxu1 %vm1586_vm2, %v4187_v43 }
 0x21b   : > { %3568 = vmatpush3.msra.mxu1 %v3174_v51  ;;  %3558 = vmatprep.mubr.msk.f32.mxu1 %vm1586_vm2, %v4191_v44 }
 0x21c   : > { %3581 = vmatprep.subr.mxu1 %v3183_v58 }
 0x21e   : > { %3559 = vmatmul.mubr.msk.f32.gmra.mrb[2].mxu1 %vm1586_vm2, %v4195_v45 }
 0x21f   : > { %3561 = vmatprep.mubr.msk.f32.mxu1 %vm1586_vm2, %v4199_v46 }
 0x222   : > { %3562 = vmatmul.mubr.msk.f32.gmra.mrb[4].mxu1 %vm1586_vm2, %v4203_v47 }
 0x223   : > { %3564 = vmatprep.mubr.msk.f32.mxu1 %vm1586_vm2, %v4207_v49 }
 0x226   : > { %3565 = vmatmul.mubr.msk.f32.gmra.mrb[6].mxu1 %vm1586_vm2, %v2048_v59 }
 0x227   : > { %3569 = vmatprep.mubr.msk.f32.mxu1 %vm1586_vm2, %v4148_v29 }
 0x22a   : > { %3570 = vmatmul.mubr.msk.f32.vlgmr.msra.gmra.mrb[0].mxu1 %vm1586_vm2, %v4156_v32 }
 0x22b   : > { %3582 = vmatpush3.msra.mxu1 %v3183_v58  ;;  %3572 = vmatprep.mubr.msk.f32.mxu1 %vm1586_vm2, %v4161_v35 }
 0x22c   : > { %3595 = vmatprep.subr.mxu1 %v3192_v60 }
 0x22e   : > { %3573 = vmatmul.mubr.msk.f32.gmra.mrb[2].mxu1 %vm1586_vm2, %v4166_v36 }
 0x22f   : > { %3575 = vmatprep.mubr.msk.f32.mxu1 %vm1586_vm2, %v4170_v37 }
 0x232   : > { %3576 = vmatmul.mubr.msk.f32.gmra.mrb[4].mxu1 %vm1586_vm2, %v4174_v38 }
 0x233   : > { %3578 = vmatprep.mubr.msk.f32.mxu1 %vm1586_vm2, %v4178_v40 }
 0x236   : > { %3579 = vmatmul.mubr.msk.f32.gmra.mrb[6].mxu1 %vm1586_vm2, %v2195_v61 }
 0x237   : > { %3583 = vmatprep.mubr.msk.f32.mxu1 %vm1586_vm2, %v1895_v50 }
 0x23a   : > { %3584 = vmatmul.mubr.msk.f32.vlgmr.msra.gmra.mrb[0].mxu1 %vm1586_vm2, %v4216_v52 }
 0x23b   : > { %3596 = vmatpush3.msra.mxu1 %v3192_v60  ;;  %3586 = vmatprep.mubr.msk.f32.mxu1 %vm1586_vm2, %v4220_v53 }
 0x23c   : > { %3609 = vmatprep.subr.mxu1 %v3201_v62 }
 0x23e   : > { %3587 = vmatmul.mubr.msk.f32.gmra.mrb[2].mxu1 %vm1586_vm2, %v4224_v54 }
 0x23f   : > { %3589 = vmatprep.mubr.msk.f32.mxu1 %vm1586_vm2, %v4228_v55 }
 0x242   : > { %3590 = vmatmul.mubr.msk.f32.gmra.mrb[4].mxu1 %vm1586_vm2, %v4232_v56 }
 0x243   : > { %3592 = vmatprep.mubr.msk.f32.mxu1 %vm1586_vm2, %v4236_v57 }
 0x246   : > { %3593 = vmatmul.mubr.msk.f32.gmra.mrb[6].mxu1 %vm1586_vm2, %v2342_v63 }
 0x247   : > { %3597 = vmatprep.mubr.msk.f32.mxu1 %vm1586_vm2, %v4187_v43 }
 0x24a   : > { %3598 = vmatmul.mubr.msk.f32.vlgmr.msra.gmra.mrb[0].mxu1 %vm1586_vm2, %v4191_v44 }
 0x24b   : > { %3610 = vmatpush3.msra.mxu1 %v3201_v62  ;;  %3600 = vmatprep.mubr.msk.f32.mxu1 %vm1586_vm2, %v4195_v45 }
 0x24c   : > { %3623 = vmatprep.subr.mxu1 %v3210_v0 }
 0x24e   : > { %3601 = vmatmul.mubr.msk.f32.gmra.mrb[2].mxu1 %vm1586_vm2, %v4199_v46 }
 0x24f   : > { %3603 = vmatprep.mubr.msk.f32.mxu1 %vm1586_vm2, %v4203_v47 }
 0x252   : > { %3604 = vmatmul.mubr.msk.f32.gmra.mrb[4].mxu1 %vm1586_vm2, %v4207_v49 }
 0x253   : > { %3606 = vmatprep.mubr.msk.f32.mxu1 %vm1586_vm2, %v2048_v59 }
 0x256   : > { %3607 = vmatmul.mubr.msk.f32.gmra.mrb[6].mxu1 %vm1586_vm2, %v2490_v1 }
 0x257   : > { %3611 = vmatprep.mubr.msk.f32.mxu1 %vm1586_vm2, %v4156_v32 }
 0x25a   : > { %3612 = vmatmul.mubr.msk.f32.vlgmr.msra.gmra.mrb[0].mxu1 %vm1586_vm2, %v4161_v35 }
 0x25b   : > { %3624 = vmatpush3.msra.mxu1 %v3210_v0  ;;  %3614 = vmatprep.mubr.msk.f32.mxu1 %vm1586_vm2, %v4166_v36 }
 0x25e   : > { %3615 = vmatmul.mubr.msk.f32.gmra.mrb[2].mxu1 %vm1586_vm2, %v4170_v37 }
 0x25f   : > { %3617 = vmatprep.mubr.msk.f32.mxu1 %vm1586_vm2, %v4174_v38 }
 0x262   : > { %3618 = vmatmul.mubr.msk.f32.gmra.mrb[4].mxu1 %vm1586_vm2, %v4178_v40 }
 0x263   : > { %3620 = vmatprep.mubr.msk.f32.mxu1 %vm1586_vm2, %v2195_v61 }
 0x266   : > { %3621 = vmatmul.mubr.msk.f32.gmra.mrb[6].mxu1 %vm1586_vm2, %v2637_v2 }
 0x267   : > { %3625 = vmatprep.mubr.msk.f32.mxu1 %vm1586_vm2, %v4216_v52 }
 0x26a   : > { %3626 = vmatmul.mubr.msk.f32.vlgmr.msra.gmra.mrb[0].mxu1 %vm1586_vm2, %v4220_v53 }
 0x26b   : > { %3628 = vmatprep.mubr.msk.f32.mxu1 %vm1586_vm2, %v4224_v54 }
 0x26e   : > { %3629 = vmatmul.mubr.msk.f32.gmra.mrb[2].mxu1 %vm1586_vm2, %v4228_v55 }
 0x26f   : > { %3631 = vmatprep.mubr.msk.f32.mxu1 %vm1586_vm2, %v4232_v56 }
 0x272   : > { %3632 = vmatmul.mubr.msk.f32.gmra.mrb[4].mxu1 %vm1586_vm2, %v4236_v57 }
 0x273   : > { %3634 = vmatprep.mubr.msk.f32.mxu1 %vm1586_vm2, %v2342_v63 }
 0x276   : > { %3635 = vmatmul.mubr.msk.f32.gmra.mrb[6].mxu1 %vm1586_vm2, %v2784_v3 }
 0x33d   : > { %v3627_v5 = vpop.f32.mrb[0].mxu1 }
 0x33e   : > { %v2931_v6 = vadd.f32 %v3627_v5, %v3219_v4  ;;  %v2877_v7 = vpop.f32.mrb[1].mxu1 }
 0x33f   : > { %v2930_v8 = vadd.f32 %v3219_v4, %v2877_v7 }
 0x340   : > { %v2939_v9 = vmax.f32 %v2931_v6, 0.0 }
 0x341   : > { %v2938_v10 = vmax.f32 %v2930_v8, 0.0  ;;  %v3630_v11 = vpop.f32.mrb[2].mxu1 }
 0x342   : > { %2947 = vst.msk [vmem:[%s224_s22 + $0x8] sm:$0xff] %vm1586_vm2, %v2939_v9  ;;  %v2933_v12 = vadd.f32 %v3630_v11, %v3219_v4  ;;  %v2887_v13 = vpop.f32.mrb[3].mxu1 }
 0x343   : > { %2946 = vst.msk [vmem:[%s224_s22] sm:$0xff] %vm1586_vm2, %v2938_v10  ;;  %v2932_v14 = vadd.f32 %v3219_v4, %v2887_v13 }
 0x344   : > { %v2941_v15 = vmax.f32 %v2933_v12, 0.0 }
 0x345   : > { %v2940_v16 = vmax.f32 %v2932_v14, 0.0  ;;  %v3633_v17 = vpop.f32.mrb[4].mxu1 }
 0x346   : > { %2949 = vst.msk [vmem:[%s224_s22 + $0x18] sm:$0xff] %vm1586_vm2, %v2941_v15  ;;  %v2935_v18 = vadd.f32 %v3633_v17, %v3219_v4  ;;  %v2897_v19 = vpop.f32.mrb[5].mxu1 }
 0x347   : > { %2948 = vst.msk [vmem:[%s224_s22 + $0x10] sm:$0xff] %vm1586_vm2, %v2940_v16  ;;  %v2934_v20 = vadd.f32 %v3219_v4, %v2897_v19 }
 0x348   : > { %v2943_v21 = vmax.f32 %v2935_v18, 0.0 }
 0x349   : > { %v2942_v22 = vmax.f32 %v2934_v20, 0.0  ;;  %v3636_v23 = vpop.f32.mrb[6].mxu1 }
 0x34a   : > { %2951 = vst.msk [vmem:[%s224_s22 + $0x28] sm:$0xff] %vm1586_vm2, %v2943_v21  ;;  %v2937_v24 = vadd.f32 %v3636_v23, %v3219_v4  ;;  %v2907_v25 = vpop.f32.mrb[7].mxu1 }
 0x34b   : > { %2950 = vst.msk [vmem:[%s224_s22 + $0x20] sm:$0xff] %vm1586_vm2, %v2942_v22  ;;  %v2936_v26 = vadd.f32 %v3219_v4, %v2907_v25 }
 0x34c   : > { %v2945_v27 = vmax.f32 %v2937_v24, 0.0 }
 0x34d   : > { %v2944_v28 = vmax.f32 %v2936_v26, 0.0 }
 0x34e   : > { %2953 = vst.msk [vmem:[%s224_s22 + $0x38] sm:$0xff] %vm1586_vm2, %v2945_v27 }
 0x34f   : > { %2952 = vst.msk [vmem:[%s224_s22 + $0x30] sm:$0xff] %vm1586_vm2, %v2944_v28 }
 0x350 PF: > { %s15_s18 = sadd.s32 1, %s3782_s18  }
 0x351   : > { %p12_p4 = scmp.ge.s32.totalorder %s15_s18, 4  }
 0x353   :  { %14 = sbr.rel (!%p12_p4) target bundleno = 1 (0x1), region = 90 }

</bundles_post_ra>
